<compile_context>
chip_gen: v7x
topology: tpu7x:2x2x1
jax: 0.10.0
libtpu: 0.0.40
codegen_flags: <defaults>
</compile_context>

<pallas_src>
import jax
import jax.numpy as jnp
from jax.experimental import pallas as pl
from jax.experimental.pallas import tpu as pltpu


def _round_up(v, m):
    return ((v + m - 1) // m) * m


def _make_kernel(bk, d_rem, lanewise):
    """Build the kernel with static tiling config baked in."""
    n_groups = bk // 128 if lanewise else 0

    def kernel(x_ref, w_ref, b_ref, o_ref, acc_ref):
        # x_ref: (bm, bk)   w_ref: (1, bk)   b_ref: (1,) f32 in SMEM
        # o_ref: (bm, 1)    acc_ref: (bm, 128) f32 (or (bm, 1) if not lanewise)
        k = pl.program_id(1)
        nk = pl.num_programs(1)

        @pl.when(k == 0)
        def _init():
            acc_ref[...] = jnp.zeros_like(acc_ref)

        x = x_ref[...].astype(jnp.float32)
        w = w_ref[...].astype(jnp.float32)
        prod = x * w                                   # (bm, bk), pure VPU

        if d_rem:
            # Ragged last reduction block: explicitly zero the tail columns
            # (do NOT rely on stale-data * zero-weight; 0*NaN = NaN).
            col = jax.lax.broadcasted_iota(jnp.int32, (1, bk), 1)
            keep = (k < nk - 1) | (col < d_rem)
            prod = jnp.where(keep, prod, 0.0)

        if lanewise:
            # Lane-wide accumulator: sum the bk//128 lane groups elementwise.
            # Static 128-aligned lane slices -> plain VPU adds, no relayout,
            # no per-step cross-lane XLU reduce, no masked (bm,1) stores.
            acc = acc_ref[...]
            for g in range(n_groups):
                acc = acc + prod[:, g * 128:(g + 1) * 128]
            acc_ref[...] = acc
        else:
            # bk < 128 (single small reduction block): direct lane reduce.
            acc_ref[...] += jnp.sum(prod, axis=-1, keepdims=True)

        @pl.when(k == nk - 1)
        def _finalize():
            if lanewise:
                res = jnp.sum(acc_ref[...], axis=-1, keepdims=True)
            else:
                res = acc_ref[...]
            o_ref[...] = (res + b_ref[0]).astype(o_ref.dtype)

    return kernel


def linear_lp_forward(x, weight, bias, *, tm_max=512, tk_max=2048):
    """out = x @ weight.T + bias  (x: (B, D), weight: (1, D), bias: (1,))."""
    B, D = x.shape
    itemsize = jnp.dtype(x.dtype).itemsize
    # Sublane granularity: 8 for 4-byte dtypes, 16 for 2-byte (bf16), 32 for 1B.
    sub = {4: 8, 2: 16, 1: 32}.get(itemsize, 8)

    # Batch tile: guarantee >= 2 batch tiles whenever B > sub so the
    # 'parallel' axis can split across v7x's two TensorCores, while staying
    # large enough to amortize the ~0.35 us per-grid-step overhead.
    if B <= sub:
        bm = B                              # equals the full dim -> always legal
    else:
        bm = min(tm_max, _round_up(pl.cdiv(B, 2), sub))

    # Reduction tile: full D when it fits, otherwise stream 128-aligned chunks.
    bk = D if D <= tk_max else tk_max
    d_rem = D % bk                          # ragged tail columns (0 if none)
    lanewise = (bk % 128 == 0)

    nb = pl.cdiv(B, bm)
    nk = pl.cdiv(D, bk)
    grid = (nb, nk)                         # reduction (D) axis last

    acc_shape = (bm, 128) if lanewise else (bm, 1)
    kernel = _make_kernel(bk, d_rem, lanewise)

    out = pl.pallas_call(
        kernel,
        out_shape=jax.ShapeDtypeStruct((B, 1), jnp.float32),
        grid_spec=pltpu.PrefetchScalarGridSpec(
            num_scalar_prefetch=0,
            grid=grid,
            in_specs=[
                # x tile: streamed / double-buffered by the Pallas pipeline;
                # ragged last blocks handled by Pallas (no host-side jnp.pad).
                pl.BlockSpec((bm, bk), lambda i, k: (i, k)),
                # weight row: lane-dense (1, bk), indexed only by k.
                pl.BlockSpec((1, bk), lambda i, k: (0, k)),
                # bias: single scalar kept in SMEM.
                pl.BlockSpec(memory_space=pltpu.MemorySpace.SMEM),
            ],
            out_specs=pl.BlockSpec((bm, 1), lambda i, k: (i, 0)),
            scratch_shapes=[pltpu.VMEM(acc_shape, jnp.float32)],
        ),
        compiler_params=pltpu.CompilerParams(
            # batch tiles independent -> megacore-shardable on v7x;
            # D is the reduction axis -> 'arbitrary'.
            dimension_semantics=("parallel", "arbitrary"),
        ),
        cost_estimate=pl.CostEstimate(
            flops=2 * B * D,
            transcendentals=0,
            bytes_accessed=(B * D * itemsize
                            + nb * D * jnp.dtype(weight.dtype).itemsize
                            + B * 4 + 4),
        ),
    )(x, weight, bias)

    # TODO(synk): self.quant is None in the reference module; no quantizer applied.
    return out


if __name__ == "__main__":
    key = jax.random.PRNGKey(0)
    k_x, k_w, k_b, k_x2, k_w2, k_b2 = jax.random.split(key, 6)

    # --- Module-default shapes: batch=8, input_dim=13 -----------------------
    batch, input_dim = 8, 13
    x = jax.random.normal(k_x, (batch, input_dim), dtype=jnp.float32)
    bound = 1.0 / jnp.sqrt(float(input_dim))
    weight = jax.random.uniform(k_w, (1, input_dim), jnp.float32, -bound, bound)
    bias = jax.random.uniform(k_b, (1,), jnp.float32, -bound, bound)

    out = jax.block_until_ready(linear_lp_forward(x, weight, bias))
    ref = x @ weight.T + bias
    assert out.shape == (batch, 1)
    assert jnp.allclose(out, ref, atol=1e-5), "mismatch vs reference (8x13)"

    # --- Non-aligned shapes: exercises ragged batch/reduction blocks --------
    B2, D2 = 50, 200
    x2 = jax.random.normal(k_x2, (B2, D2), dtype=jnp.float32)
    b2d = 1.0 / jnp.sqrt(float(D2))
    w2 = jax.random.uniform(k_w2, (1, D2), jnp.float32, -b2d, b2d)
    b2 = jax.random.uniform(k_b2, (1,), jnp.float32, -b2d, b2d)

    out2 = jax.block_until_ready(
        linear_lp_forward(x2, w2, b2, tm_max=32, tk_max=128))
    ref2 = x2 @ w2.T + b2
    assert out2.shape == (B2, 1)
    assert jnp.allclose(out2, ref2, atol=1e-4), "mismatch vs reference (50x200)"

    print("KERNEL_OK")
</pallas_src>

<mosaic_0001>
module attributes {stable_mosaic.version = 11 : i64} {
  func.func @kernel(%arg0: i32, %arg1: i32, %arg2: memref<8x13xf32, #tpu.memory_space<vmem>>, %arg3: memref<1x13xf32, #tpu.memory_space<vmem>>, %arg4: memref<1xf32, #tpu.memory_space<smem>>, %arg5: memref<8x1xf32, #tpu.memory_space<vmem>>, %arg6: memref<8x1xf32, #tpu.memory_space<vmem>>) attributes {dimension_semantics = [#tpu.dimension_semantics<parallel>, #tpu.dimension_semantics<arbitrary>], iteration_bounds = array<i64: 1, 1>, scalar_prefetch = 0 : i64, scratch_operands = 1 : i64, tpu.core_type = #tpu.core_type<tc>, window_params = [{transform_indices = @transform_0, window_bounds = array<i64: 8, 13>}, {transform_indices = @transform_1, window_bounds = array<i64: 1, 13>}, {transform_indices = @transform_2, window_bounds = array<i64: 1>}, {transform_indices = @transform_3, window_bounds = array<i64: 8, 1>}]} {
    %c0_i32 = arith.constant 0 : i32
    %0 = arith.cmpi eq, %arg1, %c0_i32 : i32
    %1 = arith.extui %0 : i1 to i32
    %c0_i32_0 = arith.constant 0 : i32
    %2 = arith.cmpi ne, %1, %c0_i32_0 : i32
    scf.if %2 {
      %cst_10 = arith.constant 0.000000e+00 : f32
      %15 = vector.broadcast %cst_10 : f32 to vector<8x1xf32>
      %c0_11 = arith.constant 0 : index
      %c0_12 = arith.constant 0 : index
      %16 = vector.load %arg6[%c0_11, %c0_12] : memref<8x1xf32, #tpu.memory_space<vmem>>, vector<8x1xf32>
      tpu.vector_store %arg6[%c0_11, %c0_12], %15 {strides = array<i32>} : memref<8x1xf32, #tpu.memory_space<vmem>>, vector<8x1xf32>,
    } else {
    }
    %c0 = arith.constant 0 : index
    %c0_1 = arith.constant 0 : index
    %3 = vector.load %arg2[%c0, %c0_1] : memref<8x13xf32, #tpu.memory_space<vmem>>, vector<8x13xf32>
    %c0_2 = arith.constant 0 : index
    %c0_3 = arith.constant 0 : index
    %4 = vector.load %arg3[%c0_2, %c0_3] : memref<1x13xf32, #tpu.memory_space<vmem>>, vector<1x13xf32>
    %5 = vector.broadcast %4 : vector<1x13xf32> to vector<8x13xf32>
    %6 = arith.mulf %3, %5 : vector<8x13xf32>
    %c0_4 = arith.constant 0 : index
    %c0_5 = arith.constant 0 : index
    %7 = vector.load %arg6[%c0_4, %c0_5] : memref<8x1xf32, #tpu.memory_space<vmem>>, vector<8x1xf32>
    %cst = arith.constant dense<0.000000e+00> : vector<8xf32>
    %8 = vector.multi_reduction <add>, %6, %cst [1] : vector<8x13xf32> to vector<8xf32>
    %9 = vector.shape_cast %8 : vector<8xf32> to vector<8x1xf32>
    %10 = arith.addf %7, %9 : vector<8x1xf32>
    %c0_6 = arith.constant 0 : index
    %c0_7 = arith.constant 0 : index
    %11 = vector.load %arg6[%c0_6, %c0_7] : memref<8x1xf32, #tpu.memory_space<vmem>>, vector<8x1xf32>
    tpu.vector_store %arg6[%c0_6, %c0_7], %10 {strides = array<i32>} : memref<8x1xf32, #tpu.memory_space<vmem>>, vector<8x1xf32>,
    %c0_i32_8 = arith.constant 0 : i32
    %12 = arith.cmpi eq, %arg1, %c0_i32_8 : i32
    %13 = arith.extui %12 : i1 to i32
    %c0_i32_9 = arith.constant 0 : i32
    %14 = arith.cmpi ne, %13, %c0_i32_9 : i32
    scf.if %14 {
      %c0_10 = arith.constant 0 : index
      %c0_11 = arith.constant 0 : index
      %15 = vector.load %arg6[%c0_10, %c0_11] : memref<8x1xf32, #tpu.memory_space<vmem>>, vector<8x1xf32>
      %c0_12 = arith.constant 0 : index
      %16 = memref.load %arg4[%c0_12] : memref<1xf32, #tpu.memory_space<smem>>
      %17 = vector.broadcast %16 : f32 to vector<8x1xf32>
      %18 = arith.addf %15, %17 : vector<8x1xf32>
      %c0_13 = arith.constant 0 : index
      %c0_14 = arith.constant 0 : index
      %19 = vector.load %arg5[%c0_13, %c0_14] : memref<8x1xf32, #tpu.memory_space<vmem>>, vector<8x1xf32>
      tpu.vector_store %arg5[%c0_13, %c0_14], %18 {strides = array<i32>} : memref<8x1xf32, #tpu.memory_space<vmem>>, vector<8x1xf32>,
    } else {
    }
    return
  }
  func.func @transform_0(%arg0: i32, %arg1: i32) -> (i32, i32) {
    %c0_i32 = arith.constant 0 : i32
    return %arg0, %arg1 : i32, i32
  }
  func.func @transform_1(%arg0: i32, %arg1: i32) -> (i32, i32) {
    %c0_i32 = arith.constant 0 : i32
    %c0_i32_0 = arith.constant 0 : i32
    return %c0_i32, %arg1 : i32, i32
  }
  func.func @transform_2(%arg0: i32, %arg1: i32) -> i32 {
    %c0_i32 = arith.constant 0 : i32
    %c0_i32_0 = arith.constant 0 : i32
    return %c0_i32 : i32
  }
  func.func @transform_3(%arg0: i32, %arg1: i32) -> (i32, i32) {
    %c0_i32 = arith.constant 0 : i32
    %c0_i32_0 = arith.constant 0 : i32
    return %arg0, %c0_i32 : i32, i32
  }
}

</mosaic_0001>

<bundles_post_ra>
// kernel: tpu_custom_call.1
= control target key start
LH: loop header
LB: loop body
LE: loop exit
PB: predicated region body
PF: predicated region fallthrough
CT: control target
= control target key end

     0   :  { %9 = vsyncpa [#allocation5], 0  ;;  %s90_s12 = smov [#allocation4]   ;;  %s136_s0 = inlined_call_operand.hbm [shape: f32[8,13], index: 0, kind: input, shape index: {}]   ;;  %s137_s1 = inlined_call_operand.vmem [shape: f32[1,13], index: 1, kind: input, shape index: {}]   ;;  %s138_s2 = inlined_call_operand.<no memory space> [shape: f32[1], index: 2, kind: input, shape index: {}]   ;;  %s139_s3 = inlined_call_operand.vmem [shape: f32[8,1], index: 3, kind: output, shape index: {}]  }
   0x1   :  { %s16_s13 = sshll.u32 %s90_s12, 4  ;;  %s66_s16 = scalar_lea.hbm %s136_s0, 128  ;;  %s17_s13 = int_to_ptr.vmem [resolvable:$true] %s16_s13 }
   0x2   :  { %p67_p0 = scmp.ne.s32.totalorder %s136_s0, %s66_s16  ;;  %p70_p1 = scmp.lt.u32.totalorder %s66_s16, %s136_s0 }
   0x4   :  { %p72_p2 = pnand %p70_p1, %p67_p0 }
   0x6   :  { %75 = shalt.err (!%p72_p2)
}
   0x7   :  { %s76_s21 = scalar_lea.vmem %s17_s13, 128  ;;  %p81_p4 = scmp.lt.s32.totalorder %s17_s13, %s17_s13 }
   0x8   :  { %p77_p3 = scmp.ne.s32.totalorder %s17_s13, %s76_s21  ;;  %p82_p5 = scmp.lt.s32.totalorder %s76_s21, %s76_s21 }
   0xa   :  { %p83_p6 = por %p82_p5, %p81_p4 }
   0xc   :  { %p84_p7 = pnand %p83_p6, %p77_p3 }
   0xe   :  { %87 = shalt.err (!%p84_p7)
}
   0xf   :  { %19 = dma.hbm_to_vmem [thread:$0]  %s136_s0, 128, %s17_s13, [#allocation5]  }
  0x10   :  { %88 = dma.done.wait [#allocation5], 128  }
  0x11   :  { %89 = vsyncadd [#allocation5], 4294967168  ;;  %vm31_vm0 = vcmask 7168   ;;  %v91_v0 = vmov 0.0   ;;  %v33_v1 = vld [vmem:[#allocation4] sm:$0xff]  ;;  %vm43_vm1 = vcmask 105472   ;;  %v55_v8 = vstv %s138_s2 }
  0x12   :  { %32 = vst.msk [vmem:[#allocation2] sm:$0xff] %vm31_vm0, %v91_v0  ;;  %v63_v2 = vld [vmem:[%s137_s1] ss:$0 sm:$0xff] }
  0x13   :  { %v41_v3 = vmul.f32 %v63_v2, %v33_v1 }
  0x15   :  { %v44_v4 = vsel %vm43_vm1, %v41_v3, 0.0 }
  0x16   :  { %45 = vadd.xlane.f32.xlu0 %v44_v4 }
  0x19   :  { %v42_v5 = vld [vmem:[#allocation2] sm:$0xff] }
  0xa3   :  { %v46_v6 = vpop.xlane.xlu0 %45 }
  0xa4   :  { %v47_v7 = vadd.f32 %v46_v6, %v42_v5 }
  0xa6   :  { %49 = vst.msk [vmem:[#allocation2] sm:$0xff] %vm31_vm0, %v47_v7 }
  0xad   :  { %v53_v9 = vld [vmem:[#allocation2] sm:$0xff] }
  0xae   :  { %v56_v10 = vadd.f32 %v55_v8, %v53_v9 }
  0xb0   :  { %57 = vst.msk [vmem:[%s139_s3] sm:$0xff] %vm31_vm0, %v56_v10 }
  0xb1   :  { %62 = vsyncpa [#allocation5], 1 }

</bundles_post_ra>
